<compile_context>
chip_gen: v6e
topology: v6e:2x2x1
jax: 0.10.0
libtpu: 0.0.40
codegen_flags: <defaults>
</compile_context>

<pallas_src>
import functools
import math

import jax
import jax.numpy as jnp
from jax.experimental import pallas as pl
from jax.experimental.pallas import tpu as pltpu

HIDDEN = (64, 32)   # expert_hidden_layers from the PyTorch module
LANE = 128          # TPU vreg lane width


def _round_up(n, m):
    return ((n + m - 1) // m) * m


def _expert_kernel(x_ref, w1_ref, b1_ref, w2_ref, b2_ref, w3_ref, b3_ref, o_ref):
    # Fused 3-layer MLP. Matmuls hit the MXU with f32 accumulation; bias/ReLU
    # run on the VPU in f32 (safe on v5e which has no bf16 VPU).
    mm_dtype = w1_ref.dtype          # matmul operand dtype (f32 or bf16)

    x = x_ref[...]
    h = jnp.dot(x, w1_ref[...], preferred_element_type=jnp.float32) + b1_ref[...]
    h = jnp.maximum(h, 0.0)

    h = jnp.dot(h.astype(mm_dtype), w2_ref[...],
                preferred_element_type=jnp.float32) + b2_ref[...]
    h = jnp.maximum(h, 0.0)

    h = jnp.dot(h.astype(mm_dtype), w3_ref[...],
                preferred_element_type=jnp.float32) + b3_ref[...]
    h = jnp.maximum(h, 0.0)

    o_ref[...] = h.astype(o_ref.dtype)


@functools.partial(jax.jit, static_argnames=("block_b", "matmul_dtype"))
def expert_forward(x, params, block_b=1024, matmul_dtype=None):
    """x: [B, input_dim].  params: dict of (in,out) weights and (1,out) biases
    (PyTorch nn.Linear weights stored transposed).  Returns [B, output_dim]."""
    B, in_dim = x.shape
    out_dim = params["w3"].shape[1]
    out_dtype = x.dtype

    # ---- pad feature dims to 128 lanes (zero pad => exact, ReLU(0)=0) -------
    def pad2(a, rows, cols):
        return jnp.pad(a, ((0, rows - a.shape[0]), (0, cols - a.shape[1])))

    w1 = pad2(params["w1"].astype(jnp.float32), in_dim, LANE)   # (in,   128)
    w2 = pad2(params["w2"].astype(jnp.float32), LANE,  LANE)    # (128,  128)
    w3 = pad2(params["w3"].astype(jnp.float32), LANE,  LANE)    # (128,  128)
    b1 = pad2(params["b1"].astype(jnp.float32), 1, LANE)        # (1, 128)
    b2 = pad2(params["b2"].astype(jnp.float32), 1, LANE)
    b3 = pad2(params["b3"].astype(jnp.float32), 1, LANE)

    # ---- pick batch tile and pad batch to a whole number of tiles -----------
    block = min(int(block_b), _round_up(B, 8))
    block = max(8, (block // 8) * 8)
    B_pad = _round_up(B, block)
    x_pad = jnp.pad(x, ((0, B_pad - B), (0, 0)))

    # ---- optional bf16 operands for the MXU (v6e/v7x) ------------------------
    if matmul_dtype is not None:
        x_pad = x_pad.astype(matmul_dtype)
        w1 = w1.astype(matmul_dtype)
        w2 = w2.astype(matmul_dtype)
        w3 = w3.astype(matmul_dtype)

    grid = (B_pad // block,)

    def const(shape):
        # weights/biases: same full block at every grid step (not re-fetched)
        return pl.BlockSpec(shape, lambda i: (0, 0))

    out = pl.pallas_call(
        _expert_kernel,
        out_shape=jax.ShapeDtypeStruct((B_pad, LANE), out_dtype),
        grid_spec=pltpu.PrefetchScalarGridSpec(
            num_scalar_prefetch=0,
            grid=grid,
            in_specs=[
                pl.BlockSpec((block, in_dim), lambda i: (i, 0)),  # x tile
                const(w1.shape), const(b1.shape),
                const(w2.shape), const(b2.shape),
                const(w3.shape), const(b3.shape),
            ],
            out_specs=pl.BlockSpec((block, LANE), lambda i: (i, 0)),
        ),
        compiler_params=pltpu.CompilerParams(
            dimension_semantics=("parallel",),   # shard steps across TCs on v7x
        ),
    )(x_pad, w1, b1, w2, b2, w3, b3)

    return out[:B, :out_dim]


def init_expert_params(key, input_dim, output_dim, dtype=jnp.float32):
    """Deterministic init matching PyTorch nn.Linear shapes (stored transposed)."""
    dims = [input_dim, HIDDEN[0], HIDDEN[1], output_dim]
    params = {}
    for layer, (fan_in, fan_out) in enumerate(zip(dims[:-1], dims[1:]), start=1):
        key, kw, kb = jax.random.split(key, 3)
        bound = 1.0 / math.sqrt(fan_in)   # PyTorch default uniform(-1/sqrt(in), 1/sqrt(in))
        params[f"w{layer}"] = jax.random.uniform(
            kw, (fan_in, fan_out), dtype, minval=-bound, maxval=bound)
        params[f"b{layer}"] = jax.random.uniform(
            kb, (1, fan_out), dtype, minval=-bound, maxval=bound)
    return params


def expert_reference(x, params):
    """Pure-JAX reference for correctness checking."""
    h = jnp.maximum(x @ params["w1"] + params["b1"], 0.0)
    h = jnp.maximum(h @ params["w2"] + params["b2"], 0.0)
    return jnp.maximum(h @ params["w3"] + params["b3"], 0.0)


if __name__ == "__main__":
    key = jax.random.PRNGKey(0)
    k_x, k_p = jax.random.split(key)

    batch, input_dim, output_dim = 16, 32, 16
    x = jax.random.normal(k_x, (batch, input_dim), jnp.float32)
    params = init_expert_params(k_p, input_dim, output_dim)

    ref = expert_reference(x, params)

    # f32 path: exact (bitwise-close) match vs reference.
    out = jax.block_until_ready(expert_forward(x, params))
    assert out.shape == (batch, output_dim)
    assert jnp.allclose(out, ref, atol=1e-5, rtol=1e-5), "f32 mismatch vs reference"

    # bf16-operand path (v6e/v7x fast path): f32 accumulation, looser tolerance.
    out_bf16 = jax.block_until_ready(
        expert_forward(x, params, matmul_dtype=jnp.bfloat16))
    assert out_bf16.shape == (batch, output_dim)
    assert jnp.allclose(out_bf16, ref, atol=1e-1, rtol=1e-1), "bf16 mismatch vs reference"

    print("KERNEL_OK")
</pallas_src>

<mosaic_0001>
module attributes {stable_mosaic.version = 11 : i64} {
  func.func @_expert_kernel(%arg0: i32, %arg1: memref<16x32xf32, #tpu.memory_space<vmem>>, %arg2: memref<32x128xf32, #tpu.memory_space<vmem>>, %arg3: memref<1x128xf32, #tpu.memory_space<vmem>>, %arg4: memref<128x128xf32, #tpu.memory_space<vmem>>, %arg5: memref<1x128xf32, #tpu.memory_space<vmem>>, %arg6: memref<128x128xf32, #tpu.memory_space<vmem>>, %arg7: memref<1x128xf32, #tpu.memory_space<vmem>>, %arg8: memref<16x128xf32, #tpu.memory_space<vmem>>) attributes {dimension_semantics = [#tpu.dimension_semantics<parallel>], iteration_bounds = array<i64: 1>, scalar_prefetch = 0 : i64, scratch_operands = 0 : i64, tpu.core_type = #tpu.core_type<tc>, window_params = [{transform_indices = @transform_0, window_bounds = array<i64: 16, 32>}, {pipeline_mode = #tpu.pipeline_mode<synchronous>, transform_indices = @transform_1, window_bounds = array<i64: 32, 128>}, {pipeline_mode = #tpu.pipeline_mode<synchronous>, transform_indices = @transform_2, window_bounds = array<i64: 1, 128>}, {pipeline_mode = #tpu.pipeline_mode<synchronous>, transform_indices = @transform_3, window_bounds = array<i64: 128, 128>}, {pipeline_mode = #tpu.pipeline_mode<synchronous>, transform_indices = @transform_4, window_bounds = array<i64: 1, 128>}, {pipeline_mode = #tpu.pipeline_mode<synchronous>, transform_indices = @transform_5, window_bounds = array<i64: 128, 128>}, {pipeline_mode = #tpu.pipeline_mode<synchronous>, transform_indices = @transform_6, window_bounds = array<i64: 1, 128>}, {transform_indices = @transform_7, window_bounds = array<i64: 16, 128>}]} {
    %c0 = arith.constant 0 : index
    %c0_0 = arith.constant 0 : index
    %0 = vector.load %arg1[%c0, %c0_0] : memref<16x32xf32, #tpu.memory_space<vmem>>, vector<16x32xf32>
    %c0_1 = arith.constant 0 : index
    %c0_2 = arith.constant 0 : index
    %1 = vector.load %arg2[%c0_1, %c0_2] : memref<32x128xf32, #tpu.memory_space<vmem>>, vector<32x128xf32>
    %cst = arith.constant dense<0.000000e+00> : vector<16x128xf32>
    %2 = tpu.matmul %0, %1, %cst {dimension_numbers = #tpu.dot_dimension_numbers<[1], [0], [0], [1], [0, 0, 1, 1], [], []>} : vector<16x32xf32>, vector<32x128xf32>, vector<16x128xf32> -> vector<16x128xf32>
    %c0_3 = arith.constant 0 : index
    %c0_4 = arith.constant 0 : index
    %3 = vector.load %arg3[%c0_3, %c0_4] : memref<1x128xf32, #tpu.memory_space<vmem>>, vector<1x128xf32>
    %4 = vector.broadcast %3 : vector<1x128xf32> to vector<16x128xf32>
    %5 = arith.addf %2, %4 : vector<16x128xf32>
    %cst_5 = arith.constant 0.000000e+00 : f32
    %6 = vector.broadcast %cst_5 : f32 to vector<16x128xf32>
    %7 = arith.maximumf %5, %6 : vector<16x128xf32>
    %c0_6 = arith.constant 0 : index
    %c0_7 = arith.constant 0 : index
    %8 = vector.load %arg4[%c0_6, %c0_7] : memref<128x128xf32, #tpu.memory_space<vmem>>, vector<128x128xf32>
    %cst_8 = arith.constant dense<0.000000e+00> : vector<16x128xf32>
    %9 = tpu.matmul %7, %8, %cst_8 {dimension_numbers = #tpu.dot_dimension_numbers<[1], [0], [0], [1], [0, 0, 1, 1], [], []>} : vector<16x128xf32>, vector<128x128xf32>, vector<16x128xf32> -> vector<16x128xf32>
    %c0_9 = arith.constant 0 : index
    %c0_10 = arith.constant 0 : index
    %10 = vector.load %arg5[%c0_9, %c0_10] : memref<1x128xf32, #tpu.memory_space<vmem>>, vector<1x128xf32>
    %11 = vector.broadcast %10 : vector<1x128xf32> to vector<16x128xf32>
    %12 = arith.addf %9, %11 : vector<16x128xf32>
    %cst_11 = arith.constant 0.000000e+00 : f32
    %13 = vector.broadcast %cst_11 : f32 to vector<16x128xf32>
    %14 = arith.maximumf %12, %13 : vector<16x128xf32>
    %c0_12 = arith.constant 0 : index
    %c0_13 = arith.constant 0 : index
    %15 = vector.load %arg6[%c0_12, %c0_13] : memref<128x128xf32, #tpu.memory_space<vmem>>, vector<128x128xf32>
    %cst_14 = arith.constant dense<0.000000e+00> : vector<16x128xf32>
    %16 = tpu.matmul %14, %15, %cst_14 {dimension_numbers = #tpu.dot_dimension_numbers<[1], [0], [0], [1], [0, 0, 1, 1], [], []>} : vector<16x128xf32>, vector<128x128xf32>, vector<16x128xf32> -> vector<16x128xf32>
    %c0_15 = arith.constant 0 : index
    %c0_16 = arith.constant 0 : index
    %17 = vector.load %arg7[%c0_15, %c0_16] : memref<1x128xf32, #tpu.memory_space<vmem>>, vector<1x128xf32>
    %18 = vector.broadcast %17 : vector<1x128xf32> to vector<16x128xf32>
    %19 = arith.addf %16, %18 : vector<16x128xf32>
    %cst_17 = arith.constant 0.000000e+00 : f32
    %20 = vector.broadcast %cst_17 : f32 to vector<16x128xf32>
    %21 = arith.maximumf %19, %20 : vector<16x128xf32>
    %c0_18 = arith.constant 0 : index
    %c0_19 = arith.constant 0 : index
    %22 = vector.load %arg8[%c0_18, %c0_19] : memref<16x128xf32, #tpu.memory_space<vmem>>, vector<16x128xf32>
    tpu.vector_store %arg8[%c0_18, %c0_19], %21 {strides = array<i32>} : memref<16x128xf32, #tpu.memory_space<vmem>>, vector<16x128xf32>,
    return
  }
  func.func @transform_0(%arg0: i32) -> (i32, i32) {
    %c0_i32 = arith.constant 0 : i32
    %c0_i32_0 = arith.constant 0 : i32
    return %arg0, %c0_i32 : i32, i32
  }
  func.func @transform_1(%arg0: i32) -> (i32, i32) {
    %c0_i32 = arith.constant 0 : i32
    %c0_i32_0 = arith.constant 0 : i32
    %c0_i32_1 = arith.constant 0 : i32
    return %c0_i32, %c0_i32_0 : i32, i32
  }
  func.func @transform_2(%arg0: i32) -> (i32, i32) {
    %c0_i32 = arith.constant 0 : i32
    %c0_i32_0 = arith.constant 0 : i32
    %c0_i32_1 = arith.constant 0 : i32
    return %c0_i32, %c0_i32_0 : i32, i32
  }
  func.func @transform_3(%arg0: i32) -> (i32, i32) {
    %c0_i32 = arith.constant 0 : i32
    %c0_i32_0 = arith.constant 0 : i32
    %c0_i32_1 = arith.constant 0 : i32
    return %c0_i32, %c0_i32_0 : i32, i32
  }
  func.func @transform_4(%arg0: i32) -> (i32, i32) {
    %c0_i32 = arith.constant 0 : i32
    %c0_i32_0 = arith.constant 0 : i32
    %c0_i32_1 = arith.constant 0 : i32
    return %c0_i32, %c0_i32_0 : i32, i32
  }
  func.func @transform_5(%arg0: i32) -> (i32, i32) {
    %c0_i32 = arith.constant 0 : i32
    %c0_i32_0 = arith.constant 0 : i32
    %c0_i32_1 = arith.constant 0 : i32
    return %c0_i32, %c0_i32_0 : i32, i32
  }
  func.func @transform_6(%arg0: i32) -> (i32, i32) {
    %c0_i32 = arith.constant 0 : i32
    %c0_i32_0 = arith.constant 0 : i32
    %c0_i32_1 = arith.constant 0 : i32
    return %c0_i32, %c0_i32_0 : i32, i32
  }
  func.func @transform_7(%arg0: i32) -> (i32, i32) {
    %c0_i32 = arith.constant 0 : i32
    %c0_i32_0 = arith.constant 0 : i32
    return %arg0, %c0_i32 : i32, i32
  }
}

</mosaic_0001>

<bundles_post_ra>
// kernel: expert_forward.1
= control target key start
LH: loop header
LB: loop body
LE: loop exit
PB: predicated region body
PF: predicated region fallthrough
CT: control target
= control target key end

     0   :  { %vm40_vm0 = vcmask 261120   ;;  %s666_s0 = inlined_call_operand.vmem [shape: f32[16,32], index: 0, kind: input, shape index: {}]   ;;  %s667_s1 = inlined_call_operand.vmem [shape: f32[32,128], index: 1, kind: input, shape index: {}]   ;;  %s668_s2 = inlined_call_operand.vmem [shape: f32[1,128], index: 2, kind: input, shape index: {}]   ;;  %s669_s3 = inlined_call_operand.vmem [shape: f32[128,128], index: 3, kind: input, shape index: {}]   ;;  %s670_s4 = inlined_call_operand.vmem [shape: f32[1,128], index: 4, kind: input, shape index: {}]   ;;  %s671_s5 = inlined_call_operand.vmem [shape: f32[128,128], index: 5, kind: input, shape index: {}]   ;;  %s672_s6 = inlined_call_operand.vmem [shape: f32[1,128], index: 6, kind: input, shape index: {}]   ;;  %s673_s7 = inlined_call_operand.hbm [shape: f32[16,128], index: 7, kind: output, shape index: {}]  }
   0x1   :  { %v32_v0 = vld [vmem:[%s667_s1 + $0x18] sm:$0xff]  ;;  %v31_v1 = vld [vmem:[%s667_s1 + $0x10] sm:$0xff]  ;;  %v27_v2 = vld [vmem:[%s666_s0] sm:$0xff] }
   0x2   :  { %389 = vmatprep.subr.mxu0 %v32_v0  ;;  %v30_v3 = vld [vmem:[%s667_s1 + $0x8] sm:$0xff]  ;;  %397 = vmatprep.mubr.msk.f32.mxu0 %vm40_vm0, %v27_v2  ;;  %v139_v4 = vld [vmem:[%s669_s3 + $0x78] sm:$0xff]  ;;  %v138_v5 = vld [vmem:[%s669_s3 + $0x70] sm:$0xff] }
   0x3   :  { %390 = vmatpush3.msra.mxu0 %v32_v0  ;;  %400 = vmatprep.subr.mxu1 %v139_v4  ;;  %v29_v6 = vld [vmem:[%s667_s1] sm:$0xff]  ;;  %v137_v7 = vld [vmem:[%s669_s3 + $0x68] sm:$0xff] }
   0x4   :  { %391 = vmatprep.subr.mxu0 %v31_v1  ;;  %401 = vmatpush3.msra.mxu1 %v139_v4  ;;  %v28_v8 = vld [vmem:[%s666_s0 + $0x8] sm:$0xff]  ;;  %v136_v9 = vld [vmem:[%s669_s3 + $0x60] sm:$0xff] }
   0x5   :  { %392 = vmatpush3.msra.mxu0 %v31_v1  ;;  %402 = vmatprep.subr.mxu1 %v138_v5 }
   0x6   :  { %393 = vmatprep.subr.mxu0 %v30_v3  ;;  %403 = vmatpush3.msra.mxu1 %v138_v5 }
   0x7   :  { %394 = vmatpush3.msra.mxu0 %v30_v3 }
   0x8   :  { %12 = vsyncpa [#allocation3], 0  ;;  %395 = vmatprep.subr.mxu0 %v29_v6  ;;  %404 = vmatprep.subr.mxu1 %v137_v7  ;;  %v135_v10 = vld [vmem:[%s669_s3 + $0x58] sm:$0xff]  ;;  %v134_v11 = vld [vmem:[%s669_s3 + $0x50] sm:$0xff] }
   0x9   :  { %396 = vmatpush3.msra.mxu0 %v29_v6  ;;  %405 = vmatpush3.msra.mxu1 %v137_v7  ;;  %v133_v12 = vld [vmem:[%s669_s3 + $0x48] sm:$0xff]  ;;  %v132_v13 = vld [vmem:[%s669_s3 + $0x40] sm:$0xff]  ;;  %v131_v14 = vld [vmem:[%s669_s3 + $0x38] sm:$0xff] }
   0xa   :  { %398 = vmatmul.mubr.msk.f32.vlgmr.msra.gmra.mxu0 %vm40_vm0, %v28_v8  ;;  %406 = vmatprep.subr.mxu1 %v136_v9  ;;  %v130_v15 = vld [vmem:[%s669_s3 + $0x30] sm:$0xff]  ;;  %v129_v16 = vld [vmem:[%s669_s3 + $0x28] sm:$0xff]  ;;  %v128_v17 = vld [vmem:[%s669_s3 + $0x20] sm:$0xff] }
   0xb   :  { %407 = vmatpush3.msra.mxu1 %v136_v9  ;;  %v127_v18 = vld [vmem:[%s669_s3 + $0x18] sm:$0xff]  ;;  %v126_v19 = vld [vmem:[%s669_s3 + $0x10] sm:$0xff]  ;;  %v125_v20 = vld [vmem:[%s669_s3 + $0x8] sm:$0xff] }
   0xc   :  { %408 = vmatprep.subr.mxu1 %v135_v10  ;;  %v124_v21 = vld [vmem:[%s669_s3] sm:$0xff]  ;;  %v239_v22 = vld [vmem:[%s671_s5 + $0x78] sm:$0xff]  ;;  %v238_v23 = vld [vmem:[%s671_s5 + $0x70] sm:$0xff] }
   0xd   :  { %409 = vmatpush3.msra.mxu1 %v135_v10  ;;  %435 = vmatprep.subr.mxu0 %v239_v22  ;;  %v237_v24 = vld [vmem:[%s671_s5 + $0x68] sm:$0xff]  ;;  %v236_v25 = vld [vmem:[%s671_s5 + $0x60] sm:$0xff]  ;;  %v235_v26 = vld [vmem:[%s671_s5 + $0x58] sm:$0xff] }
   0xe   :  { %410 = vmatprep.subr.mxu1 %v134_v11  ;;  %436 = vmatpush3.msra.mxu0 %v239_v22  ;;  %v234_v27 = vld [vmem:[%s671_s5 + $0x50] sm:$0xff]  ;;  %v233_v28 = vld [vmem:[%s671_s5 + $0x48] sm:$0xff]  ;;  %v232_v29 = vld [vmem:[%s671_s5 + $0x40] sm:$0xff] }
   0xf   :  { %411 = vmatpush3.msra.mxu1 %v134_v11  ;;  %437 = vmatprep.subr.mxu0 %v238_v23  ;;  %v231_v30 = vld [vmem:[%s671_s5 + $0x38] sm:$0xff]  ;;  %v230_v31 = vld [vmem:[%s671_s5 + $0x30] sm:$0xff]  ;;  %v229_v32 = vld [vmem:[%s671_s5 + $0x28] sm:$0xff] }
  0x10   :  { %412 = vmatprep.subr.mxu1 %v133_v12  ;;  %438 = vmatpush3.msra.mxu0 %v238_v23  ;;  %v228_v33 = vld [vmem:[%s671_s5 + $0x20] sm:$0xff]  ;;  %v227_v41 = vld [vmem:[%s671_s5 + $0x18] sm:$0xff]  ;;  %v226_v42 = vld [vmem:[%s671_s5 + $0x10] sm:$0xff] }
  0x11   :  { %413 = vmatpush3.msra.mxu1 %v133_v12  ;;  %439 = vmatprep.subr.mxu0 %v237_v24  ;;  %v342_v34 = vld [vmem:[%s668_s2] ss:$0 sm:$0xff]  ;;  %v225_v43 = vld [vmem:[%s671_s5 + $0x8] sm:$0xff] }
  0x12   :  { %414 = vmatprep.subr.mxu1 %v132_v13  ;;  %440 = vmatpush3.msra.mxu0 %v237_v24  ;;  %v224_v44 = vld [vmem:[%s671_s5] sm:$0xff]  ;;  %s495_s5 = smov [#allocation2]  }
  0x13   :  { %415 = vmatpush3.msra.mxu1 %v132_v13  ;;  %441 = vmatprep.subr.mxu0 %v236_v25  ;;  %v345_v45 = vld [vmem:[%s670_s4] ss:$0 sm:$0xff]  ;;  %s331_s28 = sshll.u32 %s495_s5, 4  ;;  %s332_s28 = int_to_ptr.vmem [resolvable:$true] %s331_s28 }
  0x14   :  { %416 = vmatprep.subr.mxu1 %v131_v14  ;;  %442 = vmatpush3.msra.mxu0 %v236_v25  ;;  %v346_v52 = vld [vmem:[%s672_s6] ss:$0 sm:$0xff]  ;;  %s473_s4 = scalar_lea.vmem %s332_s28, 256  ;;  %p478_p1 = scmp.lt.s32.totalorder %s332_s28, %s332_s28 }
  0x15   :  { %417 = vmatpush3.msra.mxu1 %v131_v14  ;;  %443 = vmatprep.subr.mxu0 %v235_v26  ;;  %p474_p0 = scmp.ne.s32.totalorder %s332_s28, %s473_s4  ;;  %p479_p2 = scmp.lt.s32.totalorder %s473_s4, %s473_s4 }
  0x16   :  { %418 = vmatprep.subr.mxu1 %v130_v15  ;;  %444 = vmatpush3.msra.mxu0 %v235_v26 }
  0x17   :  { %419 = vmatpush3.msra.mxu1 %v130_v15  ;;  %445 = vmatprep.subr.mxu0 %v234_v27  ;;  %p480_p3 = por %p479_p2, %p478_p1 }
  0x18   :  { %420 = vmatprep.subr.mxu1 %v129_v16  ;;  %446 = vmatpush3.msra.mxu0 %v234_v27 }
  0x19   :  { %421 = vmatpush3.msra.mxu1 %v129_v16  ;;  %447 = vmatprep.subr.mxu0 %v233_v28  ;;  %p481_p4 = pnand %p480_p3, %p474_p0 }
  0x1a   :  { %422 = vmatprep.subr.mxu1 %v128_v17  ;;  %448 = vmatpush3.msra.mxu0 %v233_v28 }
  0x1b   :  { %423 = vmatpush3.msra.mxu1 %v128_v17  ;;  %449 = vmatprep.subr.mxu0 %v232_v29 }
  0x1c   :  { %424 = vmatprep.subr.mxu1 %v127_v18  ;;  %450 = vmatpush3.msra.mxu0 %v232_v29 }
  0x1d   :  { %425 = vmatpush3.msra.mxu1 %v127_v18  ;;  %451 = vmatprep.subr.mxu0 %v231_v30 }
  0x1e   :  { %426 = vmatprep.subr.mxu1 %v126_v19  ;;  %452 = vmatpush3.msra.mxu0 %v231_v30 }
  0x1f   :  { %427 = vmatpush3.msra.mxu1 %v126_v19  ;;  %453 = vmatprep.subr.mxu0 %v230_v31 }
  0x20   :  { %428 = vmatprep.subr.mxu1 %v125_v20  ;;  %454 = vmatpush3.msra.mxu0 %v230_v31 }
  0x21   :  { %429 = vmatpush3.msra.mxu1 %v125_v20  ;;  %455 = vmatprep.subr.mxu0 %v229_v32 }
  0x22   :  { %430 = vmatprep.subr.mxu1 %v124_v21  ;;  %456 = vmatpush3.msra.mxu0 %v229_v32 }
  0x23   :  { %431 = vmatpush3.msra.mxu1 %v124_v21  ;;  %457 = vmatprep.subr.mxu0 %v228_v33 }
  0x24   :  { %458 = vmatpush3.msra.mxu0 %v228_v33 }
  0x25   :  { %459 = vmatprep.subr.mxu0 %v227_v41 }
  0x26   :  { %460 = vmatpush3.msra.mxu0 %v227_v41 }
  0x27   :  { %461 = vmatprep.subr.mxu0 %v226_v42 }
  0x28   :  { %462 = vmatpush3.msra.mxu0 %v226_v42 }
  0x29   :  { %463 = vmatprep.subr.mxu0 %v225_v43 }
  0x2a   :  { %464 = vmatpush3.msra.mxu0 %v225_v43 }
  0x2b   :  { %465 = vmatprep.subr.mxu0 %v224_v44 }
  0x2c   :  { %466 = vmatpush3.msra.mxu0 %v224_v44 }
  0xca   :  { %v399_v35 = vpop.f32.mrf.mxu0 }
  0xcb   :  { %v119_v36 = vadd.f32 %v399_v35, %v342_v34 }
  0xcc   :  { %v113_v37 = vpop.f32.mrf.mxu0 }
  0xcd   :  { %v114_v38 = vadd.f32 %v342_v34, %v113_v37  ;;  %v123_v40 = vmax.f32 %v119_v36, 0.0 }
  0xcf   :  { %v122_v39 = vmax.f32 %v114_v38, 0.0 }
  0xd1   :  { %432 = vmatprep.mubr.f32.mxu1 %v122_v39 }
  0xd2   :  { %433 = vmatmul.mubr.f32.vlgmr.msra.gmra.mxu1 %v123_v40 }
 0x192   :  { %v434_v46 = vpop.f32.mrf.mxu1 }
 0x193   :  { %v219_v47 = vadd.f32 %v434_v46, %v345_v45 }
 0x194   :  { %v213_v48 = vpop.f32.mrf.mxu1 }
 0x195   :  { %v214_v49 = vadd.f32 %v345_v45, %v213_v48  ;;  %v223_v51 = vmax.f32 %v219_v47, 0.0 }
 0x197   :  { %v222_v50 = vmax.f32 %v214_v49, 0.0 }
 0x199   :  { %467 = vmatprep.mubr.f32.mxu0 %v222_v50 }
 0x19a   :  { %468 = vmatmul.mubr.f32.vlgmr.msra.gmra.mxu0 %v223_v51 }
 0x25a   :  { %v469_v53 = vpop.f32.mrf.mxu0 }
 0x25b   :  { %v319_v54 = vadd.f32 %v469_v53, %v346_v52 }
 0x25c   :  { %v313_v55 = vpop.f32.mrf.mxu0 }
 0x25d   :  { %v323_v56 = vmax.f32 %v319_v54, 0.0  ;;  %v314_v57 = vadd.f32 %v346_v52, %v313_v55 }
 0x25f   :  { %325 = vst [vmem:[#allocation2 + $0x8] sm:$0xff] %v323_v56  ;;  %v322_v58 = vmax.f32 %v314_v57, 0.0 }
 0x261   :  { %324 = vst [vmem:[#allocation2] sm:$0xff] %v322_v58 }
 0x262   :  { %484 = shalt.err (!%p481_p4)
}
 0x263   :  { %s496_s29 = smov 128   ;;  %s497_s6 = smov 8  }
 0x264   :  { %337 = dma.vmem_to_hbm [thread:$0]  %s332_s28, 256, %s673_s7, [#allocation3], %s496_s29, %s496_s29, %s497_s6  }
 0x265   :  { %493 = dma.done.wait [#allocation3], 256  }
 0x266   :  { %494 = vsyncadd [#allocation3], 4294967040 }
 0x267   :  { %341 = vsyncpa [#allocation3], 1 }

</bundles_post_ra>
